<compile_context>
chip_gen: v7x
topology: tpu7x:2x2x1
jax: 0.10.0
libtpu: 0.0.40
codegen_flags: <defaults>
</compile_context>

<pallas_src>
import functools

import jax
import jax.numpy as jnp
from jax.experimental import pallas as pl
from jax.experimental.pallas import tpu as pltpu


GEM_EPS = 1e-6        # GeM.__init__ default eps (passed into gem())
GEM_MAX = 10000.0
BN_EPS = 1e-5

_LANE = 128
_SUBLANE = 8
_MIB = 1024 * 1024


def _round_up(v, m):
    return ((v + m - 1) // m) * m


def _cdiv(a, b):
    return -(-a // b)


def _tpu_kind():
    try:
        return jax.devices()[0].device_kind.lower()
    except Exception:
        return ""


def _bf16_eup_ok():
    # bf16 EUP transcendentals exist on v6e/v7x; v5e (and older) stay f32.
    kind = _tpu_kind()
    return any(tag in kind for tag in ("v6", "v7", "7x"))


def _vmem_capacity_bytes():
    try:
        cap = int(pltpu.get_tpu_info().vmem_capacity_bytes)
        if cap > 0:
            return cap
    except Exception:
        pass
    kind = _tpu_kind()
    if any(tag in kind for tag in ("v7", "7x")):
        return 64 * _MIB
    if any(tag in kind for tag in ("v5", "v6")):
        return 128 * _MIB
    return 64 * _MIB     # conservative fallback


def _resident_spec(shape):
    """Constant-index parameter block: stays VMEM-resident, single-buffered."""
    idx = lambda n, k: (0,) * len(shape)
    try:
        return pl.BlockSpec(shape, idx, pipeline_mode=pl.Buffered(1))
    except Exception:
        # Older JAX without pipeline_mode/Buffered: fall back to default buffering.
        return pl.BlockSpec(shape, idx)


def ring_head_kernel(p_ref,                    # SMEM (1,): GeM p parameter
                     x_ref,                    # VMEM (tn, C, t_hw) activation tile
                     w1_ref, b1_ref,           # BN1-folded Linear1: (C, Fp), (1, Fp)
                     s2_ref, sh2_ref,          # BN2 scale/shift: (1, Fp)
                     *rest,                    # [w2 (Fp,Kp)], [preds], feats, acc
                     hw, t_hw, gem_bf16, mxu_bf16, with_preds):
    if with_preds:
        w2_ref, preds_ref, feats_ref, acc_ref = rest
    else:
        feats_ref, acc_ref = rest

    k = pl.program_id(1)
    p = jnp.maximum(p_ref[0], 0.1)             # torch.clamp(self.p, min=0.1)

    @pl.when(k == 0)
    def _():
        acc_ref[...] = jnp.zeros_like(acc_ref)

    # ---- GeM partial reduction over this HW chunk (HW on the lane axis) -----
    # ReLU followed by clamp(min=eps, max=1e4) == clip(x, eps, 1e4) since eps>0.
    x = jnp.clip(x_ref[...], GEM_EPS, GEM_MAX)                 # (tn, C, t_hw)
    if gem_bf16:
        # bf16 EUP log/exp (v6e/v7x); p multiply in f32; f32 accumulation.
        lx = jnp.log(x.astype(jnp.bfloat16))
        xp = jnp.exp((lx.astype(jnp.float32) * p).astype(jnp.bfloat16))
    else:
        xp = jnp.exp(p * jnp.log(x.astype(jnp.float32)))       # x ** p  (x > 0)
    if hw % t_hw != 0:
        # Ragged spatial tail masked in-kernel (no host-side pad of x).
        lane = jax.lax.broadcasted_iota(jnp.int32, xp.shape, 2)
        xp = jnp.where(k * t_hw + lane < hw, xp, 0.0)
    acc_ref[...] += jnp.sum(xp, axis=2, dtype=jnp.float32)     # (tn, C)

    # ---- epilogue on the last HW chunk ---------------------------------------
    @pl.when(k == pl.num_programs(1) - 1)
    def _():
        # Valid rows satisfy pooled >= eps**p >> 1e-30; the floor only guards
        # garbage batch-padding rows (it is NOT part of the reference math).
        pooled = jnp.maximum(acc_ref[...] * (1.0 / hw), 1e-30)  # mean over true H*W
        f0 = jnp.exp(jnp.log(pooled) * (1.0 / p))               # (.)^(1/p); >0, |.| redundant
        if mxu_bf16:
            f0 = f0.astype(jnp.bfloat16)
        # BN1 folded into (w1, b1) on host; Dropout identity in eval.
        h = jnp.dot(f0, w1_ref[...],
                    preferred_element_type=jnp.float32) + b1_ref[...]
        # CELU(alpha=1): exp only of the non-positive branch (no overflow).
        h = jnp.where(h > 0.0, h, jnp.exp(jnp.minimum(h, 0.0)) - 1.0)
        # BN2 (eval) as precomputed scale/shift.
        feats = h * s2_ref[...] + sh2_ref[...]
        feats_ref[...] = feats
        if with_preds:
            clf_in = feats.astype(jnp.bfloat16) if mxu_bf16 else feats
            preds_ref[...] = jnp.dot(clf_in, w2_ref[...],
                                     preferred_element_type=jnp.float32)


def ring_head_forward(x_nchw, params, *, gem_bf16=None, mxu_bf16=None):
    """RingHead forward (eval mode).  x_nchw: (N, C, H, W), C == in_feat.

    gem_bf16 / mxu_bf16 = None -> auto-select (bf16 EUP on v6e/v7x, bf16 MXU
    everywhere).  Pass False for strict-f32 numerics.
    """
    if gem_bf16 is None:
        gem_bf16 = _bf16_eup_ok()
    if mxu_bf16 is None:
        mxu_bf16 = True            # MXU is bf16-native on v5e/v6e/v7x

    N, C, H, W = x_nchw.shape
    HW = H * W
    F = params["w1"].shape[1]          # feat_dim
    K = params["w2"].shape[1]          # num_classes

    # ---- host-side param folding (one-time, tiny) ---------------------------
    s1 = params["bn1_gamma"] / jnp.sqrt(params["bn1_var"] + BN_EPS)       # (1, C)
    w1f = params["w1"] * s1.reshape(C, 1)                                 # (C, F)
    b1f = params["b1"] + (params["bn1_beta"] - params["bn1_mean"] * s1) @ params["w1"]
    s2 = params["bn2_gamma"] / jnp.sqrt(params["bn2_var"] + BN_EPS)       # (1, F)
    sh2 = params["bn2_beta"] - params["bn2_mean"] * s2                    # (1, F)

    wdt = jnp.bfloat16 if mxu_bf16 else jnp.float32
    Fp = _round_up(F, _LANE)           # lane-dense feats output
    Kp = _round_up(K, _LANE)           # lane-dense preds output

    # ---- generation-dependent VMEM budget ------------------------------------
    vmem_cap = _vmem_capacity_bytes()
    vmem_limit = (vmem_cap * 3) // 4               # ~48 MiB v7x, ~96 MiB v5e/v6e

    # clf matmul stays in-kernel only while w2 is small; for realistic
    # num_classes it is hoisted to a plain XLA dot on the tiny feats tensor.
    w2_bytes = Fp * Kp * jnp.dtype(wdt).itemsize
    clf_in_kernel = w2_bytes <= min(8 * _MIB, vmem_limit // 6)

    # ---- batch tile (>= 2 blocks when possible, for megacore sharding) ------
    if N <= _SUBLANE:
        tn = N
    else:
        tn = min(_LANE, _round_up(N, _SUBLANE))
        if _cdiv(N, tn) < 2:
            tn = max(_SUBLANE, _round_up(_cdiv(N, 2), _SUBLANE))

    # ---- spatial chunk: as big as the VMEM budget allows ---------------------
    x_itemsize = jnp.dtype(x_nchw.dtype).itemsize   # bf16 feature maps stream as-is
    param_bytes = C * Fp * jnp.dtype(wdt).itemsize + 3 * Fp * 4
    if clf_in_kernel:
        param_bytes += w2_bytes
    out_bytes = 2 * tn * (Fp + (Kp if clf_in_kernel else 0) + C) * 4
    # Budget ~= 2 in-flight x buffers + ~4 elementwise temporaries of one tile.
    x_cap = max(512 * 1024, (vmem_limit - param_bytes - out_bytes) // 6)

    min_t_hw = HW if HW <= _LANE else _LANE
    while tn > _SUBLANE and tn * C * min_t_hw * x_itemsize > x_cap:
        tn = max(_SUBLANE, _round_up(tn // 2, _SUBLANE))
    if tn * C * HW * x_itemsize <= x_cap:
        t_hw = HW                                   # whole spatial extent per step
    else:
        t_hw = max(_LANE, (x_cap // (tn * C * x_itemsize)) // _LANE * _LANE)

    n_blocks = _cdiv(N, tn)
    hw_steps = _cdiv(HW, t_hw)
    Np = n_blocks * tn
    grid = (n_blocks, hw_steps)

    # ---- layout: NCHW -> (N, C, H*W) is a free minor-dim merge (no copy) -----
    x = x_nchw.reshape(N, C, HW)

    w1p = jnp.pad(w1f, ((0, 0), (0, Fp - F))).astype(wdt)
    b1p = jnp.pad(b1f, ((0, 0), (0, Fp - F)))
    s2p = jnp.pad(s2, ((0, 0), (0, Fp - F)))
    sh2p = jnp.pad(sh2, ((0, 0), (0, Fp - F)))

    smem_spec = pl.BlockSpec(memory_space=pltpu.MemorySpace.SMEM)
    in_specs = [
        smem_spec,                                             # gem_p
        pl.BlockSpec((tn, C, t_hw), lambda n, k: (n, 0, k)),   # streamed x tile
        _resident_spec((C, Fp)),                               # w1'
        _resident_spec((1, Fp)),                               # b1'
        _resident_spec((1, Fp)),                               # s2
        _resident_spec((1, Fp)),                               # sh2
    ]
    args = [params["gem_p"], x, w1p, b1p, s2p, sh2p]
    if clf_in_kernel:
        w2p = jnp.pad(params["w2"], ((0, Fp - F), (0, Kp - K))).astype(wdt)
        in_specs.append(_resident_spec((Fp, Kp)))              # w2
        args.append(w2p)

    feats_shape = jax.ShapeDtypeStruct((Np, Fp), jnp.float32)
    feats_spec = pl.BlockSpec((tn, Fp), lambda n, k: (n, 0))
    if clf_in_kernel:
        out_shape = (jax.ShapeDtypeStruct((Np, Kp), jnp.float32), feats_shape)
        out_specs = (pl.BlockSpec((tn, Kp), lambda n, k: (n, 0)), feats_spec)
    else:
        out_shape = (feats_shape,)
        out_specs = (feats_spec,)

    kernel = functools.partial(ring_head_kernel, hw=HW, t_hw=t_hw,
                               gem_bf16=gem_bf16, mxu_bf16=mxu_bf16,
                               with_preds=clf_in_kernel)

    cost = pl.CostEstimate(
        flops=2 * Np * C * Fp + (2 * Np * Fp * Kp if clf_in_kernel else 0),
        transcendentals=2 * N * HW * C + 3 * Np * C,
        bytes_accessed=(N * HW * C * x_itemsize + param_bytes
                        + 4 * Np * (Fp + (Kp if clf_in_kernel else 0))),
    )

    outs = pl.pallas_call(
        kernel,
        out_shape=out_shape,
        grid_spec=pltpu.PrefetchScalarGridSpec(
            num_scalar_prefetch=0,
            grid=grid,
            in_specs=in_specs,
            out_specs=out_specs,
            scratch_shapes=[pltpu.VMEM((tn, C), jnp.float32)],
        ),
        compiler_params=pltpu.CompilerParams(
            dimension_semantics=("parallel", "arbitrary"),
            vmem_limit_bytes=int(vmem_limit),
        ),
        cost_estimate=cost,
    )(*args)

    if clf_in_kernel:
        preds_p, feats_p = outs
        feats = feats_p[:N, :F]
        preds = preds_p[:N, :K]
    else:
        (feats_p,) = outs
        feats = feats_p[:N, :F]
        clf_dt = jnp.bfloat16 if mxu_bf16 else jnp.float32
        preds = jnp.dot(feats.astype(clf_dt), params["w2"].astype(clf_dt),
                        preferred_element_type=jnp.float32)
    return preds, feats


def make_params(key, in_feat, feat_dim, num_classes):
    k1, k2, k3 = jax.random.split(key, 3)
    bound1 = 1.0 / (in_feat ** 0.5)
    bound2 = 1.0 / (feat_dim ** 0.5)
    return {
        # GeM(3.74) parameter
        "gem_p": jnp.array([3.74], dtype=jnp.float32),
        # BatchNorm1d(in_feat) default init (eval / running stats)
        "bn1_gamma": jnp.ones((1, in_feat), jnp.float32),
        "bn1_beta": jnp.zeros((1, in_feat), jnp.float32),
        "bn1_mean": jnp.zeros((1, in_feat), jnp.float32),
        "bn1_var": jnp.ones((1, in_feat), jnp.float32),
        # Linear(in_feat, feat_dim) — stored pre-transposed (in_feat, feat_dim)
        "w1": jax.random.uniform(k1, (in_feat, feat_dim), jnp.float32,
                                 -bound1, bound1),
        "b1": jax.random.uniform(k2, (1, feat_dim), jnp.float32,
                                 -bound1, bound1),
        # BatchNorm1d(feat_dim) default init
        "bn2_gamma": jnp.ones((1, feat_dim), jnp.float32),
        "bn2_beta": jnp.zeros((1, feat_dim), jnp.float32),
        "bn2_mean": jnp.zeros((1, feat_dim), jnp.float32),
        "bn2_var": jnp.ones((1, feat_dim), jnp.float32),
        # Linear(feat_dim, num_classes, bias=False) — pre-transposed
        "w2": jax.random.uniform(k3, (feat_dim, num_classes), jnp.float32,
                                 -bound2, bound2),
    }


def ring_head_reference(x_nchw, params):
    """Pure-JAX reference mirroring the PyTorch eval forward."""
    p = jnp.maximum(params["gem_p"][0], 0.1)
    x = jnp.clip(jnp.maximum(x_nchw, 0.0), GEM_EPS, GEM_MAX)
    f0 = jnp.abs(jnp.mean(x ** p, axis=(2, 3)) ** (1.0 / p))          # (N, C)
    y = (f0 - params["bn1_mean"]) / jnp.sqrt(params["bn1_var"] + BN_EPS)
    y = y * params["bn1_gamma"] + params["bn1_beta"]
    h = y @ params["w1"] + params["b1"]
    h = jnp.where(h > 0.0, h, jnp.exp(jnp.minimum(h, 0.0)) - 1.0)
    feats = (h - params["bn2_mean"]) / jnp.sqrt(params["bn2_var"] + BN_EPS)
    feats = feats * params["bn2_gamma"] + params["bn2_beta"]
    preds = feats @ params["w2"]
    return preds, feats


if __name__ == "__main__":
    # small shapes: batch=2, channels=in_feat=4, spatial=16x16,
    #               feat_dim=32, num_classes=8
    N, C, H, W = 2, 4, 16, 16
    FEAT_DIM, NUM_CLASSES = 32, 8

    key = jax.random.PRNGKey(0)
    kx, kp = jax.random.split(key)
    x = jax.random.normal(kx, (N, C, H, W), dtype=jnp.float32)
    params = make_params(kp, in_feat=C, feat_dim=FEAT_DIM,
                         num_classes=NUM_CLASSES)

    preds_ref, feats_ref = ring_head_reference(x, params)

    # Strict f32 path: exact-precision validation against the reference.
    preds, feats = ring_head_forward(x, params, gem_bf16=False, mxu_bf16=False)
    jax.block_until_ready((preds, feats))
    assert preds.shape == (N, NUM_CLASSES) and feats.shape == (N, FEAT_DIM)
    assert jnp.allclose(preds, preds_ref, atol=1e-4, rtol=1e-4)
    assert jnp.allclose(feats, feats_ref, atol=1e-4, rtol=1e-4)

    # Generation-tuned fast path (bf16 EUP/MXU where available): loose check.
    preds_fast, feats_fast = ring_head_forward(x, params)
    jax.block_until_ready((preds_fast, feats_fast))
    assert preds_fast.shape == (N, NUM_CLASSES) and feats_fast.shape == (N, FEAT_DIM)
    assert jnp.allclose(preds_fast, preds_ref, atol=5e-2, rtol=5e-2)
    assert jnp.allclose(feats_fast, feats_ref, atol=5e-2, rtol=5e-2)

    print("KERNEL_OK")
</pallas_src>

<mosaic_0001>
module attributes {stable_mosaic.version = 11 : i64} {
  func.func @ring_head_kernel(%arg0: i32, %arg1: i32, %arg2: memref<1xf32, #tpu.memory_space<smem>>, %arg3: memref<2x4x256xf32, #tpu.memory_space<vmem>>, %arg4: memref<4x128xf32, #tpu.memory_space<vmem>>, %arg5: memref<1x128xf32, #tpu.memory_space<vmem>>, %arg6: memref<1x128xf32, #tpu.memory_space<vmem>>, %arg7: memref<1x128xf32, #tpu.memory_space<vmem>>, %arg8: memref<128x128xf32, #tpu.memory_space<vmem>>, %arg9: memref<2x128xf32, #tpu.memory_space<vmem>>, %arg10: memref<2x128xf32, #tpu.memory_space<vmem>>, %arg11: memref<2x4xf32, #tpu.memory_space<vmem>>) attributes {dimension_semantics = [#tpu.dimension_semantics<parallel>, #tpu.dimension_semantics<arbitrary>], iteration_bounds = array<i64: 1, 1>, scalar_prefetch = 0 : i64, scratch_operands = 1 : i64, tpu.core_type = #tpu.core_type<tc>, window_params = [{transform_indices = @transform_0, window_bounds = array<i64: 1>}, {transform_indices = @transform_1, window_bounds = array<i64: 2, 4, 256>}, {pipeline_mode = #tpu.pipeline_mode<synchronous>, transform_indices = @transform_2, window_bounds = array<i64: 4, 128>}, {pipeline_mode = #tpu.pipeline_mode<synchronous>, transform_indices = @transform_3, window_bounds = array<i64: 1, 128>}, {pipeline_mode = #tpu.pipeline_mode<synchronous>, transform_indices = @transform_4, window_bounds = array<i64: 1, 128>}, {pipeline_mode = #tpu.pipeline_mode<synchronous>, transform_indices = @transform_5, window_bounds = array<i64: 1, 128>}, {pipeline_mode = #tpu.pipeline_mode<synchronous>, transform_indices = @transform_6, window_bounds = array<i64: 128, 128>}, {transform_indices = @transform_7, window_bounds = array<i64: 2, 128>}, {transform_indices = @transform_8, window_bounds = array<i64: 2, 128>}]} {
    %c0 = arith.constant 0 : index
    %0 = memref.load %arg2[%c0] : memref<1xf32, #tpu.memory_space<smem>>
    %cst = arith.constant 1.000000e-01 : f32
    %1 = arith.maximumf %0, %cst : f32
    %c0_i32 = arith.constant 0 : i32
    %2 = arith.cmpi eq, %arg1, %c0_i32 : i32
    %3 = arith.extui %2 : i1 to i32
    %c0_i32_0 = arith.constant 0 : i32
    %4 = arith.cmpi ne, %3, %c0_i32_0 : i32
    scf.if %4 {
      %cst_13 = arith.constant 0.000000e+00 : f32
      %21 = vector.broadcast %cst_13 : f32 to vector<2x4xf32>
      %c0_14 = arith.constant 0 : index
      %c0_15 = arith.constant 0 : index
      %22 = vector.load %arg11[%c0_14, %c0_15] : memref<2x4xf32, #tpu.memory_space<vmem>>, vector<2x4xf32>
      tpu.vector_store %arg11[%c0_14, %c0_15], %21 {strides = array<i32>} : memref<2x4xf32, #tpu.memory_space<vmem>>, vector<2x4xf32>,
    } else {
    }
    %c0_1 = arith.constant 0 : index
    %c0_2 = arith.constant 0 : index
    %c0_3 = arith.constant 0 : index
    %5 = vector.load %arg3[%c0_1, %c0_2, %c0_3] : memref<2x4x256xf32, #tpu.memory_space<vmem>>, vector<2x4x256xf32>
    %cst_4 = arith.constant 9.99999997E-7 : f32
    %cst_5 = arith.constant 1.000000e+04 : f32
    %6 = vector.broadcast %cst_4 : f32 to vector<2x4x256xf32>
    %7 = arith.maximumf %6, %5 : vector<2x4x256xf32>
    %8 = vector.broadcast %cst_5 : f32 to vector<2x4x256xf32>
    %9 = arith.minimumf %8, %7 : vector<2x4x256xf32>
    %10 = math.log %9 : vector<2x4x256xf32>
    %11 = vector.broadcast %1 : f32 to vector<2x4x256xf32>
    %12 = arith.mulf %11, %10 : vector<2x4x256xf32>
    %13 = math.exp %12 : vector<2x4x256xf32>
    %c0_6 = arith.constant 0 : index
    %c0_7 = arith.constant 0 : index
    %14 = vector.load %arg11[%c0_6, %c0_7] : memref<2x4xf32, #tpu.memory_space<vmem>>, vector<2x4xf32>
    %cst_8 = arith.constant dense<0.000000e+00> : vector<2x4xf32>
    %15 = vector.multi_reduction <add>, %13, %cst_8 [2] : vector<2x4x256xf32> to vector<2x4xf32>
    %16 = arith.addf %14, %15 : vector<2x4xf32>
    %c0_9 = arith.constant 0 : index
    %c0_10 = arith.constant 0 : index
    %17 = vector.load %arg11[%c0_9, %c0_10] : memref<2x4xf32, #tpu.memory_space<vmem>>, vector<2x4xf32>
    tpu.vector_store %arg11[%c0_9, %c0_10], %16 {strides = array<i32>} : memref<2x4xf32, #tpu.memory_space<vmem>>, vector<2x4xf32>,
    %c0_i32_11 = arith.constant 0 : i32
    %18 = arith.cmpi eq, %arg1, %c0_i32_11 : i32
    %19 = arith.extui %18 : i1 to i32
    %c0_i32_12 = arith.constant 0 : i32
    %20 = arith.cmpi ne, %19, %c0_i32_12 : i32
    scf.if %20 {
      %c0_13 = arith.constant 0 : index
      %c0_14 = arith.constant 0 : index
      %21 = vector.load %arg11[%c0_13, %c0_14] : memref<2x4xf32, #tpu.memory_space<vmem>>, vector<2x4xf32>
      %cst_15 = arith.constant 3.906250e-03 : f32
      %22 = vector.broadcast %cst_15 : f32 to vector<2x4xf32>
      %23 = arith.mulf %21, %22 : vector<2x4xf32>
      %cst_16 = arith.constant 1.000000e-30 : f32
      %24 = vector.broadcast %cst_16 : f32 to vector<2x4xf32>
      %25 = arith.maximumf %23, %24 : vector<2x4xf32>
      %26 = math.log %25 : vector<2x4xf32>
      %cst_17 = arith.constant 1.000000e+00 : f32
      %27 = arith.divf %cst_17, %1 : f32
      %28 = vector.broadcast %27 : f32 to vector<2x4xf32>
      %29 = arith.mulf %26, %28 : vector<2x4xf32>
      %30 = math.exp %29 : vector<2x4xf32>
      %c0_18 = arith.constant 0 : index
      %c0_19 = arith.constant 0 : index
      %31 = vector.load %arg4[%c0_18, %c0_19] : memref<4x128xf32, #tpu.memory_space<vmem>>, vector<4x128xf32>
      %cst_20 = arith.constant dense<0.000000e+00> : vector<2x128xf32>
      %32 = tpu.matmul %30, %31, %cst_20 {dimension_numbers = #tpu.dot_dimension_numbers<[1], [0], [0], [1], [0, 0, 1, 1], [], []>} : vector<2x4xf32>, vector<4x128xf32>, vector<2x128xf32> -> vector<2x128xf32>
      %c0_21 = arith.constant 0 : index
      %c0_22 = arith.constant 0 : index
      %33 = vector.load %arg5[%c0_21, %c0_22] : memref<1x128xf32, #tpu.memory_space<vmem>>, vector<1x128xf32>
      %34 = vector.broadcast %33 : vector<1x128xf32> to vector<2x128xf32>
      %35 = arith.addf %32, %34 : vector<2x128xf32>
      %cst_23 = arith.constant 0.000000e+00 : f32
      %36 = vector.broadcast %cst_23 : f32 to vector<2x128xf32>
      %37 = arith.cmpf ogt, %35, %36 : vector<2x128xf32>
      %cst_24 = arith.constant 0.000000e+00 : f32
      %38 = vector.broadcast %cst_24 : f32 to vector<2x128xf32>
      %39 = arith.minimumf %35, %38 : vector<2x128xf32>
      %40 = math.exp %39 : vector<2x128xf32>
      %cst_25 = arith.constant 1.000000e+00 : f32
      %41 = vector.broadcast %cst_25 : f32 to vector<2x128xf32>
      %42 = arith.subf %40, %41 : vector<2x128xf32>
      %43 = arith.select %37, %35, %42 : vector<2x128xi1>, vector<2x128xf32>
      %c0_26 = arith.constant 0 : index
      %c0_27 = arith.constant 0 : index
      %44 = vector.load %arg6[%c0_26, %c0_27] : memref<1x128xf32, #tpu.memory_space<vmem>>, vector<1x128xf32>
      %45 = vector.broadcast %44 : vector<1x128xf32> to vector<2x128xf32>
      %46 = arith.mulf %43, %45 : vector<2x128xf32>
      %c0_28 = arith.constant 0 : index
      %c0_29 = arith.constant 0 : index
      %47 = vector.load %arg7[%c0_28, %c0_29] : memref<1x128xf32, #tpu.memory_space<vmem>>, vector<1x128xf32>
      %48 = vector.broadcast %47 : vector<1x128xf32> to vector<2x128xf32>
      %49 = arith.addf %46, %48 : vector<2x128xf32>
      %c0_30 = arith.constant 0 : index
      %c0_31 = arith.constant 0 : index
      %50 = vector.load %arg10[%c0_30, %c0_31] : memref<2x128xf32, #tpu.memory_space<vmem>>, vector<2x128xf32>
      tpu.vector_store %arg10[%c0_30, %c0_31], %49 {strides = array<i32>} : memref<2x128xf32, #tpu.memory_space<vmem>>, vector<2x128xf32>,
      %c0_32 = arith.constant 0 : index
      %c0_33 = arith.constant 0 : index
      %51 = vector.load %arg8[%c0_32, %c0_33] : memref<128x128xf32, #tpu.memory_space<vmem>>, vector<128x128xf32>
      %cst_34 = arith.constant dense<0.000000e+00> : vector<2x128xf32>
      %52 = tpu.matmul %49, %51, %cst_34 {dimension_numbers = #tpu.dot_dimension_numbers<[1], [0], [0], [1], [0, 0, 1, 1], [], []>} : vector<2x128xf32>, vector<128x128xf32>, vector<2x128xf32> -> vector<2x128xf32>
      %c0_35 = arith.constant 0 : index
      %c0_36 = arith.constant 0 : index
      %53 = vector.load %arg9[%c0_35, %c0_36] : memref<2x128xf32, #tpu.memory_space<vmem>>, vector<2x128xf32>
      tpu.vector_store %arg9[%c0_35, %c0_36], %52 {strides = array<i32>} : memref<2x128xf32, #tpu.memory_space<vmem>>, vector<2x128xf32>,
    } else {
    }
    return
  }
  func.func @transform_0(%arg0: i32, %arg1: i32) -> i32 {
    %c0_i32 = arith.constant 0 : i32
    %c0_i32_0 = arith.constant 0 : i32
    return %c0_i32 : i32
  }
  func.func @transform_1(%arg0: i32, %arg1: i32) -> (i32, i32, i32) {
    %c0_i32 = arith.constant 0 : i32
    %c0_i32_0 = arith.constant 0 : i32
    return %arg0, %c0_i32, %arg1 : i32, i32, i32
  }
  func.func @transform_2(%arg0: i32, %arg1: i32) -> (i32, i32) {
    %c0_i32 = arith.constant 0 : i32
    %c0_i32_0 = arith.constant 0 : i32
    %c0_i32_1 = arith.constant 0 : i32
    return %c0_i32, %c0_i32_0 : i32, i32
  }
  func.func @transform_3(%arg0: i32, %arg1: i32) -> (i32, i32) {
    %c0_i32 = arith.constant 0 : i32
    %c0_i32_0 = arith.constant 0 : i32
    %c0_i32_1 = arith.constant 0 : i32
    return %c0_i32, %c0_i32_0 : i32, i32
  }
  func.func @transform_4(%arg0: i32, %arg1: i32) -> (i32, i32) {
    %c0_i32 = arith.constant 0 : i32
    %c0_i32_0 = arith.constant 0 : i32
    %c0_i32_1 = arith.constant 0 : i32
    return %c0_i32, %c0_i32_0 : i32, i32
  }
  func.func @transform_5(%arg0: i32, %arg1: i32) -> (i32, i32) {
    %c0_i32 = arith.constant 0 : i32
    %c0_i32_0 = arith.constant 0 : i32
    %c0_i32_1 = arith.constant 0 : i32
    return %c0_i32, %c0_i32_0 : i32, i32
  }
  func.func @transform_6(%arg0: i32, %arg1: i32) -> (i32, i32) {
    %c0_i32 = arith.constant 0 : i32
    %c0_i32_0 = arith.constant 0 : i32
    %c0_i32_1 = arith.constant 0 : i32
    return %c0_i32, %c0_i32_0 : i32, i32
  }
  func.func @transform_7(%arg0: i32, %arg1: i32) -> (i32, i32) {
    %c0_i32 = arith.constant 0 : i32
    %c0_i32_0 = arith.constant 0 : i32
    return %arg0, %c0_i32 : i32, i32
  }
  func.func @transform_8(%arg0: i32, %arg1: i32) -> (i32, i32) {
    %c0_i32 = arith.constant 0 : i32
    %c0_i32_0 = arith.constant 0 : i32
    return %arg0, %c0_i32 : i32, i32
  }
}

</mosaic_0001>

<bundles_post_ra>
// kernel: tpu_custom_call.1
= control target key start
LH: loop header
LB: loop body
LE: loop exit
PB: predicated region body
PF: predicated region fallthrough
CT: control target
= control target key end

     0   :  { %15 = vsyncpa [#allocation5], 0  ;;  %s698_s0 = inlined_call_operand.<no memory space> [shape: f32[1], index: 0, kind: input, shape index: {}]   ;;  %s699_s1 = inlined_call_operand.hbm [shape: f32[2,4,256], index: 1, kind: input, shape index: {}]   ;;  %s700_s2 = inlined_call_operand.vmem [shape: f32[4,128], index: 2, kind: input, shape index: {}]   ;;  %s701_s3 = inlined_call_operand.vmem [shape: f32[1,128], index: 3, kind: input, shape index: {}]   ;;  %s702_s4 = inlined_call_operand.vmem [shape: f32[1,128], index: 4, kind: input, shape index: {}]   ;;  %s703_s5 = inlined_call_operand.vmem [shape: f32[1,128], index: 5, kind: input, shape index: {}]   ;;  %s704_s6 = inlined_call_operand.hbm [shape: f32[128,128], index: 6, kind: input, shape index: {}]   ;;  %s705_s7 = inlined_call_operand.hbm [shape: f32[2,128], index: 7, kind: output, shape index: {0}]   ;;  %s706_s8 = inlined_call_operand.hbm [shape: f32[2,128], index: 8, kind: output, shape index: {1}]  }
   0x1   :  { %16 = vsyncpa [#allocation8], 0 }
   0x2   :  { %17 = vsyncpa [#allocation6], 0 }
   0x3   :  { %18 = vsyncpa [#allocation11], 0  ;;  %s573_s27 = smov [#allocation4]   ;;  %s477_s9 = scalar_lea.hbm %s699_s1, 256 }
   0x4   :  { %s26_s28 = sshll.u32 %s573_s27, 4  ;;  %p478_p0 = scmp.ne.s32.totalorder %s699_s1, %s477_s9  ;;  %s27_s28 = int_to_ptr.vmem [resolvable:$true] %s26_s28 }
   0x5   :  { %p481_p1 = scmp.lt.u32.totalorder %s477_s9, %s699_s1 }
   0x7   :  { %p483_p2 = pnand %p481_p1, %p478_p0 }
   0x9   :  { %486 = shalt.err (!%p483_p2)
}
   0xa   :  { %s487_s14 = scalar_lea.vmem %s27_s28, 256  ;;  %p492_p4 = scmp.lt.s32.totalorder %s27_s28, %s27_s28 }
   0xb   :  { %p488_p3 = scmp.ne.s32.totalorder %s27_s28, %s487_s14  ;;  %p493_p5 = scmp.lt.s32.totalorder %s487_s14, %s487_s14 }
   0xd   :  { %p494_p6 = por %p493_p5, %p492_p4 }
   0xf   :  { %p495_p7 = pnand %p494_p6, %p488_p3 }
  0x11   :  { %498 = shalt.err (!%p495_p7)
}
  0x12   :  { %s574_s15 = smov 128   ;;  %s575_s16 = smov 8  }
  0x13   :  { %32 = dma.hbm_to_vmem [thread:$0]  %s699_s1, 256, %s27_s28, [#allocation5], %s574_s15, %s574_s15, %s575_s16  }
  0x14   :  { %s576_s19 = smov [#allocation7]   ;;  %s499_s23 = scalar_lea.hbm %s704_s6, 2048 }
  0x15   :  { %s46_s20 = sshll.u32 %s576_s19, 4  ;;  %p500_p8 = scmp.ne.s32.totalorder %s704_s6, %s499_s23  ;;  %s47_s20 = int_to_ptr.vmem [resolvable:$true] %s46_s20 }
  0x16   :  { %p503_p9 = scmp.lt.u32.totalorder %s499_s23, %s704_s6 }
  0x18   :  { %p505_p10 = pnand %p503_p9, %p500_p8 }
  0x1a   :  { %508 = shalt.err (!%p505_p10)
}
  0x1b   :  { %s509_s29 = scalar_lea.vmem %s47_s20, 2048  ;;  %p514_p12 = scmp.lt.s32.totalorder %s47_s20, %s47_s20 }
  0x1c   :  { %p510_p11 = scmp.ne.s32.totalorder %s47_s20, %s509_s29  ;;  %p515_p13 = scmp.lt.s32.totalorder %s509_s29, %s509_s29 }
  0x1e   :  { %p516_p0 = por %p515_p13, %p514_p12 }
  0x20   :  { %p517_p1 = pnand %p516_p0, %p510_p11 }
  0x22   :  { %520 = shalt.err (!%p517_p1)
}
  0x23   :  { %52 = dma.hbm_to_vmem [thread:$0]  %s704_s6, 2048, %s47_s20, [#allocation8], %s574_s15, %s574_s15, %s575_s16  }
  0x24   :  { %565 = dma.done.wait [#allocation5], 256  }
  0x25   :  { %566 = vsyncadd [#allocation5], 4294967040 }
  0x26   :  { %567 = dma.done.wait [#allocation8], 2048  }
  0x27   :  { %568 = vsyncadd [#allocation8], 4294965248  ;;  %s577_s30 = smov 0.1   ;;  %v67_v1 = vld [vmem:[#allocation4] sm:$0xff]  ;;  %v68_v2 = vld [vmem:[#allocation4 + $0x8] sm:$0xff]  ;;  %v104_v35 = vlaneseq }
  0x28   :  { %s60_s11 = smax.f32 %s577_s30, %s698_s0  ;;  %v69_v3 = vmax.f32 %v67_v1, 1e-06  ;;  %v70_v4 = vmax.f32 %v68_v2, 1e-06  ;;  %vm91_vm0 = vcmask 1043456   ;;  %vm65_vm1 = vcmask 25600  }
  0x29   :  { %v77_v0 = vstv %s60_s11  ;;  %v578_v26 = vmov 0.0   ;;  %v135_v27 = vld [vmem:[%s700_s2] sm:$0xf]  ;;  %vm579_vm2 = vmmov 0   ;;  %v243_v28 = vld [vmem:[#allocation7] sm:$0xff]  ;;  %v580_v31 = vmov 0.0|0.0  }
  0x2a   :  { %461 = vrcp.f32 %v77_v0  ;;  %v71_v5 = vmin.f32 %v69_v3, 10000.0  ;;  %v72_v6 = vmin.f32 %v70_v4, 10000.0  ;;  %66 = vst.msk [vmem:[#allocation2] sm:$0x3] %vm65_vm1, %v578_v26  ;;  %385 = vmatprep.subr.mxu0 %v578_v26  ;;  %387 = vmatprep.mubr.msk.f32.mxu0 %vm579_vm2, %v578_v26  ;;  %v244_v29 = vld [vmem:[#allocation7 + $0x8] sm:$0xff]  ;;  %v245_v30 = vld [vmem:[#allocation7 + $0x10] sm:$0xff] }
  0x2b   :  { %386 = vmatpush3.msk.msra.mxu0 %vm91_vm0, %v135_v27  ;;  %422 = vmatprep.mubr.msk.f32.mxu1 %vm579_vm2, %v578_v26  ;;  %v426_v32 = vpack.c.bf16 %v244_v29, %v243_v28  ;;  %v246_v33 = vld [vmem:[#allocation7 + $0x18] sm:$0xff]  ;;  %v105_v36 = vand.u32 127, %v104_v35  ;;  %v107_v37 = vshrl.u32 %v104_v35, 7  ;;  %vm114_vm3 = vcmask 1041409   ;;  %v247_v55 = vld [vmem:[#allocation7 + $0x20] sm:$0xff]  ;;  %v248_v56 = vld [vmem:[#allocation7 + $0x28] sm:$0xff] }
  0x2c   :  { %463 = vlog2.f32 %v71_v5  ;;  %425 = vmatprep.subr.bf16.mxu1 %v580_v31  ;;  %v429_v34 = vpack.c.bf16 %v246_v33, %v245_v30  ;;  %vm143_vm4 = vcmask 31744   ;;  %v432_v57 = vpack.c.bf16 %v248_v56, %v247_v55  ;;  %v249_v58 = vld [vmem:[#allocation7 + $0x30] sm:$0xff]  ;;  %v250_v59 = vld [vmem:[#allocation7 + $0x38] sm:$0xff]  ;;  %v251_v61 = vld [vmem:[#allocation7 + $0x40] sm:$0xff] }
  0x2d   :  { %465 = vlog2.f32 %v72_v6  ;;  %427 = vmatpush3.bf16.msra.mxu1 %v426_v32  ;;  %v108_v39 = vsub.s32 %v105_v36, %v107_v37  ;;  %v435_v60 = vpack.c.bf16 %v250_v59, %v249_v58  ;;  %v252_v62 = vld [vmem:[#allocation7 + $0x48] sm:$0xff]  ;;  %v254_v1 = vld [vmem:[#allocation7 + $0x58] sm:$0xff]  ;;  %v255_v3 = vld [vmem:[#allocation7 + $0x60] sm:$0xff] }
  0x2e   :  { %428 = vmatprep.subr.bf16.mxu1 %v580_v31  ;;  %v438_v63 = vpack.c.bf16 %v252_v62, %v251_v61  ;;  %v256_v4 = vld [vmem:[#allocation7 + $0x68] sm:$0xff]  ;;  %v257_v6 = vld [vmem:[#allocation7 + $0x70] sm:$0xff] }
  0x2f   :  { %v444_v5 = vpack.c.bf16 %v256_v4, %v255_v3 }
  0x31   :  { %430 = vmatpush3.bf16.msra.mxu1 %v429_v34  ;;  %v84_v43 = vld [vmem:[#allocation2] sm:$0x3] }
  0x32   :  { %431 = vmatprep.subr.bf16.mxu1 %v580_v31 }
  0x34   :  { %v462_v7 = vpop.eup %461 }
  0x35   :  { %449 = vpush %v462_v7  ;;  %433 = vmatpush3.bf16.msra.mxu1 %v432_v57  ;;  %v258_v7 = vld [vmem:[#allocation7 + $0x78] sm:$0xff] }
  0x36   :  { %v464_v8 = vpop.eup %463  ;;  %434 = vmatprep.subr.bf16.mxu1 %v580_v31 }
  0x37   :  { %v466_v9 = vpop.eup %465  ;;  %v74_v10 = vmul.f32 0.6931472, %v464_v8  ;;  %v447_v8 = vpack.c.bf16 %v258_v7, %v257_v6 }
  0x38   :  { %v76_v11 = vmul.f32 0.6931472, %v466_v9  ;;  %v360_v9 = vld [vmem:[%s701_s3] ss:$0 sm:$0xff]  ;;  %s581_s3 = smov [#allocation10]  }
  0x39   :  { %v78_v12 = vmul.f32 %v77_v0, %v74_v10  ;;  %436 = vmatpush3.bf16.msra.mxu1 %v435_v60  ;;  %s346_s18 = sshll.u32 %s581_s3, 4  ;;  %s347_s18 = int_to_ptr.vmem [resolvable:$true] %s346_s18 }
  0x3a   :  { %v79_v13 = vmul.f32 %v77_v0, %v76_v11  ;;  %437 = vmatprep.subr.bf16.mxu1 %v580_v31  ;;  %v253_v0 = vld [vmem:[#allocation7 + $0x50] sm:$0xff]  ;;  %s521_s19 = scalar_lea.vmem %s347_s18, 32  ;;  %p526_p3 = scmp.lt.s32.totalorder %s347_s18, %s347_s18 }
  0x3b   :  { %v80_v14 = vmul.f32 1.442695, %v78_v12  ;;  %v441_v2 = vpack.c.bf16 %v254_v1, %v253_v0  ;;  %p522_p2 = scmp.ne.s32.totalorder %s347_s18, %s521_s19  ;;  %p527_p4 = scmp.lt.s32.totalorder %s521_s19, %s521_s19 }
  0x3c   :  { %v82_v15 = vmul.f32 1.442695, %v79_v13 }
  0x3d   :  { %467 = vpow2.f32 %v80_v14  ;;  %439 = vmatpush3.bf16.msra.mxu1 %v438_v63  ;;  %p528_p5 = por %p527_p4, %p526_p3 }
  0x3e   :  { %469 = vpow2.f32 %v82_v15  ;;  %440 = vmatprep.subr.bf16.mxu1 %v580_v31 }
  0x3f   :  { %p529_p6 = pnand %p528_p5, %p522_p2 }
  0x41   :  { %442 = vmatpush3.bf16.msra.mxu1 %v441_v2 }
  0x42   :  { %443 = vmatprep.subr.bf16.mxu1 %v580_v31 }
  0x45   :  { %445 = vmatpush3.bf16.msra.mxu1 %v444_v5 }
  0x46   :  { %446 = vmatprep.subr.bf16.mxu1 %v580_v31 }
  0x47   :  { %v468_v16 = vpop.eup %467 }
  0x48   :  { %v470_v17 = vpop.eup %469  ;;  %v87_v18 = vcombine.high %v468_v16, %v468_v16  ;;  %v92_v19 = vsel %vm91_vm0, %v468_v16, 0.0 }
  0x49   :  { %v88_v20 = vcombine.high %v470_v17, %v470_v17  ;;  %v97_v22 = vsel %vm91_vm0, %v470_v17, 0.0  ;;  %448 = vmatpush3.bf16.msra.mxu1 %v447_v8  ;;  %v364_v17 = vld [vmem:[%s702_s4] ss:$0 sm:$0xff] }
  0x4a   :  { %v93_v21 = vsel %vm91_vm0, %v87_v18, 0.0 }
  0x4b   :  { %v94_v23 = vadd.f32 %v93_v21, %v92_v19  ;;  %v98_v24 = vsel %vm91_vm0, %v88_v20, 0.0  ;;  %v365_v19 = vld [vmem:[%s703_s5] ss:$0 sm:$0xff] }
  0x4c   :  { %v99_v25 = vadd.f32 %v98_v24, %v97_v22 }
  0x4d   :  { %95 = vadd.xlane.f32.xlu0 %v94_v23 }
  0x51   :  { %100 = vadd.xlane.f32.xlu0 %v99_v25 }
  0x66   :  { %s450_s2 = spop %449 }
  0x67   :  { %v131_v50 = vstv %s450_s2 }
  0xda   :  { %v96_v38 = vpop.xlane.xlu0 %95 }
  0xdb   :  { %v109_v41 = vrot.slane %v96_v38, %v108_v39 }
  0xde   :  { %v101_v40 = vpop.xlane.xlu0 %100 }
  0xdf   :  { %v113_v42 = vrot.slane %v101_v40, %v108_v39 }
  0xe1   :  { %v115_v44 = vsel %vm114_vm3, %v113_v42, %v109_v41 }
  0xe2   :  { %v117_v45 = vadd.f32 %v115_v44, %v84_v43 }
  0xe4   :  { %119 = vst.msk [vmem:[#allocation2] sm:$0x3] %vm65_vm1, %v117_v45 }
  0xeb   :  { %v123_v46 = vld [vmem:[#allocation2] sm:$0x3] }
  0xec   :  { %v124_v47 = vmul.f32 0.00390625, %v123_v46 }
  0xee   :  { %v125_v48 = vmax.f32 %v124_v47, 1e-30 }
  0xf0   :  { %471 = vlog2.f32 %v125_v48 }
  0xfa   :  { %v472_v49 = vpop.eup %471 }
  0xfb   :  { %v127_v51 = vmul.f32 0.6931472, %v472_v49 }
  0xfd   :  { %v132_v52 = vmul.f32 %v131_v50, %v127_v51 }
  0xff   :  { %v133_v53 = vmul.f32 1.442695, %v132_v52 }
 0x101   :  { %473 = vpow2.f32 %v133_v53 }
 0x10b   :  { %v474_v54 = vpop.eup %473 }
 0x10c   :  { %388 = vmatmul.mubr.msk.f32.vlgmr.msra.gmra.mrb[0].mxu0 %vm143_vm4, %v474_v54 }
 0x1df   :  { %v216_v10 = vpop.f32.mrb[0].mxu0 }
 0x1e0   :  { %v217_v11 = vadd.f32 %v360_v9, %v216_v10  ;;  %v389_v12 = vpop.f32.mrb[1].mxu0 }
 0x1e2   :  { %v221_v13 = vmin.f32 %v217_v11, 0.0  ;;  %vm220_vm5 = vcmp.gt.f32.partialorder %v217_v11, 0.0 }
 0x1e4   :  { %v222_v14 = vmul.f32 1.442695, %v221_v13 }
 0x1e6   :  { %475 = vpow2.f32 %v222_v14 }
 0x1f0   :  { %v476_v15 = vpop.eup %475 }
 0x1f1   :  { %v363_v16 = vadd.f32 -1.0, %v476_v15 }
 0x1f3   :  { %v225_v18 = vsel %vm220_vm5, %v217_v11, %v363_v16 }
 0x1f4   :  { %v233_v20 = vmul.f32 %v364_v17, %v225_v18 }
 0x1f6   :  { %v241_v21 = vadd.f32 %v365_v19, %v233_v20 }
 0x1f8   :  { %423 = vmatmul.mubr.f32.vlgmr.msra.gmra.mrb[0].mxu1 %v241_v21  ;;  %242 = vst [vmem:[#allocation10] sm:$0x3] %v241_v21 }
 0x1f9   :  { %532 = shalt.err (!%p529_p6)
}
 0x1fa   :  { %s533_s21 = scalar_lea.hbm %s706_s8, 32 }
 0x1fb   :  { %p534_p7 = scmp.ne.s32.totalorder %s706_s8, %s533_s21  ;;  %p537_p8 = scmp.lt.u32.totalorder %s533_s21, %s706_s8 }
 0x1fd   :  { %p539_p9 = pnand %p537_p8, %p534_p7 }
 0x1ff   :  { %542 = shalt.err (!%p539_p9)
}
 0x200   :  { %349 = dma.vmem_to_hbm [thread:$0]  %s347_s18, 32, %s706_s8, [#allocation11]  }
 0x201   :  { %s582_s27 = smov [#allocation9]  }
 0x202   :  { %s336_s29 = sshll.u32 %s582_s27, 4  ;;  %s337_s29 = int_to_ptr.vmem [resolvable:$true] %s336_s29 }
 0x203   :  { %s543_s1 = scalar_lea.vmem %s337_s29, 32  ;;  %p548_p11 = scmp.lt.s32.totalorder %s337_s29, %s337_s29 }
 0x204   :  { %p544_p10 = scmp.ne.s32.totalorder %s337_s29, %s543_s1  ;;  %p549_p12 = scmp.lt.s32.totalorder %s543_s1, %s543_s1 }
 0x206   :  { %p550_p13 = por %p549_p12, %p548_p11 }
 0x208   :  { %p551_p0 = pnand %p550_p13, %p544_p10 }
 0x2cb   :  { %v325_v22 = vpop.f32.mrb[0].mxu1 }
 0x2cc   :  { %329 = vst [vmem:[#allocation9] sm:$0x3] %v325_v22  ;;  %v424_v23 = vpop.f32.mrb[1].mxu1 }
 0x2cd   :  { %554 = shalt.err (!%p551_p0)
}
 0x2ce   :  { %s555_s9 = scalar_lea.hbm %s705_s7, 32 }
 0x2cf   :  { %p556_p1 = scmp.ne.s32.totalorder %s705_s7, %s555_s9  ;;  %p559_p2 = scmp.lt.u32.totalorder %s555_s9, %s705_s7 }
 0x2d1   :  { %p561_p3 = pnand %p559_p2, %p556_p1 }
 0x2d3   :  { %564 = shalt.err (!%p561_p3)
}
 0x2d4   :  { %339 = dma.vmem_to_hbm [thread:$0]  %s337_s29, 32, %s705_s7, [#allocation6]  }
 0x2d5   :  { %569 = dma.done.wait [#allocation6], 32  }
 0x2d6   :  { %570 = vsyncadd [#allocation6], 4294967264 }
 0x2d7   :  { %571 = dma.done.wait [#allocation11], 32  }
 0x2d8   :  { %572 = vsyncadd [#allocation11], 4294967264 }
 0x2d9   :  { %356 = vsyncpa [#allocation5], 1 }
 0x2da   :  { %357 = vsyncpa [#allocation8], 1 }
 0x2db   :  { %358 = vsyncpa [#allocation6], 1 }
 0x2dc   :  { %359 = vsyncpa [#allocation11], 1 }

</bundles_post_ra>
